<compile_context>
chip_gen: v6e
topology: v6e:2x2x1
jax: 0.10.0
libtpu: 0.0.40
codegen_flags: <defaults>
</compile_context>

<pallas_src>
import math

import jax
import jax.numpy as jnp
from jax.experimental import pallas as pl
from jax.experimental.pallas import tpu as pltpu

# ---- shapes implied by the module docstring: M* = (2, 96, 400) ----
B = 2
D_MODEL = 96          # channel dim of each M_i; w1/w2 have length 2*D_MODEL
L = 400               # sequence length
NEG_INF = -1e30


# ============================================================================
# Fused kernel: one grid step per batch element.
#   w_ref   : (3, 2, D)  w_ref[0] acts on M1, w_ref[1] on M2, w_ref[2] on M3
#   m*_ref  : (1, D, L)
#   mask_ref: (1, 1, L)  (1.0 = padded, 0.0 = valid)
#   p_ref   : (1, 2, L)  row 0 = log p1, row 1 = log p2
# ============================================================================
def _pointer_kernel(w_ref, m1_ref, m2_ref, m3_ref, mask_ref, p_ref):
    m1 = m1_ref[0]                     # (D, L)
    m2 = m2_ref[0]
    m3 = m3_ref[0]
    mask = mask_ref[0]                 # (1, L)

    # Channel reduction on the MXU:
    #   row 0 of y == w1 . cat([M1, M2], ch);  row 1 == w2 . cat([M1, M3], ch)
    y = jnp.dot(w_ref[0], m1, preferred_element_type=jnp.float32)
    y = y + jnp.dot(w_ref[1], m2, preferred_element_type=jnp.float32)
    y = y + jnp.dot(w_ref[2], m3, preferred_element_type=jnp.float32)   # (2, L)

    # mask_logits: target * (1 - mask) + mask * (-1e30)
    y = y * (1.0 - mask) + mask * NEG_INF

    # log_softmax over the sequence (lane) axis
    mx = jnp.max(y, axis=-1, keepdims=True)                  # (2, 1)
    z = y - mx
    lse = jnp.log(jnp.sum(jnp.exp(z), axis=-1, keepdims=True))
    p_ref[0] = z - lse                                       # (2, L) lane-dense store


@jax.jit
def pointer_forward(M1, M2, M3, mask, w1, w2):
    """M1/M2/M3: (B, D, L); mask: (B, L); w1/w2: (2*D,).  Returns (p1, p2), each (B, L)."""
    Bn, D, Ln = M1.shape
    zeros = jnp.zeros((D,), M1.dtype)
    # Pre-split the pointer weights per M-input so the in-kernel reduction is
    # three clean (2, D) x (D, L) matmuls — no concat of the big activations
    # and no lane-crossing slices inside the kernel.
    w_eff = jnp.stack(
        [
            jnp.stack([w1[:D], w2[:D]], axis=0),   # both rows read M1
            jnp.stack([w1[D:], zeros], axis=0),    # only row 0 (w1) reads M2
            jnp.stack([zeros, w2[D:]], axis=0),    # only row 1 (w2) reads M3
        ],
        axis=0,
    )                                              # (3, 2, D)
    mask3 = mask.reshape(Bn, 1, Ln).astype(jnp.float32)

    p = pl.pallas_call(
        _pointer_kernel,
        out_shape=jax.ShapeDtypeStruct((Bn, 2, Ln), jnp.float32),
        grid=(Bn,),
        in_specs=[
            pl.BlockSpec((3, 2, D), lambda b: (0, 0, 0)),
            pl.BlockSpec((1, D, Ln), lambda b: (b, 0, 0)),
            pl.BlockSpec((1, D, Ln), lambda b: (b, 0, 0)),
            pl.BlockSpec((1, D, Ln), lambda b: (b, 0, 0)),
            pl.BlockSpec((1, 1, Ln), lambda b: (b, 0, 0)),
        ],
        out_specs=pl.BlockSpec((1, 2, Ln), lambda b: (b, 0, 0)),
        compiler_params=pltpu.CompilerParams(dimension_semantics=("parallel",)),
    )(w_eff, M1, M2, M3, mask3)
    return p[:, 0, :], p[:, 1, :]


# ============================================================================
# Plain-JAX reference (mirrors the PyTorch module exactly)
# ============================================================================
def pointer_reference(M1, M2, M3, mask, w1, w2):
    X1 = jnp.concatenate([M1, M2], axis=1)              # (B, 2D, L)
    X2 = jnp.concatenate([M1, M3], axis=1)
    Y1 = jnp.einsum("c,bcl->bl", w1, X1)
    Y2 = jnp.einsum("c,bcl->bl", w2, X2)
    Y1 = Y1 * (1.0 - mask) + mask * NEG_INF
    Y2 = Y2 * (1.0 - mask) + mask * NEG_INF
    p1 = jax.nn.log_softmax(Y1, axis=1)
    p2 = jax.nn.log_softmax(Y2, axis=1)
    return p1, p2


if __name__ == "__main__":
    key = jax.random.PRNGKey(0)
    k1, k2, k3, kw1, kw2 = jax.random.split(key, 5)

    M1 = jax.random.normal(k1, (B, D_MODEL, L), jnp.float32)
    M2 = jax.random.normal(k2, (B, D_MODEL, L), jnp.float32)
    M3 = jax.random.normal(k3, (B, D_MODEL, L), jnp.float32)

    lim = math.sqrt(3.0 / (2 * D_MODEL))
    w1 = jax.random.uniform(kw1, (2 * D_MODEL,), jnp.float32, -lim, lim)
    w2 = jax.random.uniform(kw2, (2 * D_MODEL,), jnp.float32, -lim, lim)

    # mask: 1.0 at padded positions, 0.0 at valid positions (QANet convention)
    lengths = jnp.array([L, L - 37], jnp.int32)
    mask = (jnp.arange(L)[None, :] >= lengths[:, None]).astype(jnp.float32)

    p1, p2 = pointer_forward(M1, M2, M3, mask, w1, w2)
    p1, p2 = jax.block_until_ready((p1, p2))

    r1, r2 = pointer_reference(M1, M2, M3, mask, w1, w2)
    assert p1.shape == (B, L) and p2.shape == (B, L), (p1.shape, p2.shape)
    assert jnp.allclose(p1, r1, atol=2e-4, rtol=1e-4), float(jnp.max(jnp.abs(p1 - r1)))
    assert jnp.allclose(p2, r2, atol=2e-4, rtol=1e-4), float(jnp.max(jnp.abs(p2 - r2)))

    print("KERNEL_OK")
</pallas_src>

<mosaic_0001>
module attributes {stable_mosaic.version = 11 : i64} {
  func.func @_pointer_kernel(%arg0: i32, %arg1: memref<3x2x96xf32, #tpu.memory_space<vmem>>, %arg2: memref<1x96x400xf32, #tpu.memory_space<vmem>>, %arg3: memref<1x96x400xf32, #tpu.memory_space<vmem>>, %arg4: memref<1x96x400xf32, #tpu.memory_space<vmem>>, %arg5: memref<1x1x400xf32, #tpu.memory_space<vmem>>, %arg6: memref<1x2x400xf32, #tpu.memory_space<vmem>>) attributes {dimension_semantics = [#tpu.dimension_semantics<parallel>], iteration_bounds = array<i64: 2>, scalar_prefetch = 0 : i64, scratch_operands = 0 : i64, tpu.core_type = #tpu.core_type<tc>, window_params = [{pipeline_mode = #tpu.pipeline_mode<synchronous>, transform_indices = @transform_0, window_bounds = array<i64: 3, 2, 96>}, {transform_indices = @transform_1, window_bounds = array<i64: 1, 96, 400>}, {transform_indices = @transform_2, window_bounds = array<i64: 1, 96, 400>}, {transform_indices = @transform_3, window_bounds = array<i64: 1, 96, 400>}, {transform_indices = @transform_4, window_bounds = array<i64: 1, 1, 400>}, {transform_indices = @transform_5, window_bounds = array<i64: 1, 2, 400>}]} {
    %c0 = arith.constant 0 : index
    %c0_0 = arith.constant 0 : index
    %c0_1 = arith.constant 0 : index
    %0 = vector.load %arg2[%c0, %c0_0, %c0_1] : memref<1x96x400xf32, #tpu.memory_space<vmem>>, vector<1x96x400xf32>
    %1 = vector.shape_cast %0 : vector<1x96x400xf32> to vector<96x400xf32>
    %c0_2 = arith.constant 0 : index
    %c0_3 = arith.constant 0 : index
    %c0_4 = arith.constant 0 : index
    %2 = vector.load %arg3[%c0_2, %c0_3, %c0_4] : memref<1x96x400xf32, #tpu.memory_space<vmem>>, vector<1x96x400xf32>
    %3 = vector.shape_cast %2 : vector<1x96x400xf32> to vector<96x400xf32>
    %c0_5 = arith.constant 0 : index
    %c0_6 = arith.constant 0 : index
    %c0_7 = arith.constant 0 : index
    %4 = vector.load %arg4[%c0_5, %c0_6, %c0_7] : memref<1x96x400xf32, #tpu.memory_space<vmem>>, vector<1x96x400xf32>
    %5 = vector.shape_cast %4 : vector<1x96x400xf32> to vector<96x400xf32>
    %c0_8 = arith.constant 0 : index
    %c0_9 = arith.constant 0 : index
    %c0_10 = arith.constant 0 : index
    %6 = vector.load %arg5[%c0_8, %c0_9, %c0_10] : memref<1x1x400xf32, #tpu.memory_space<vmem>>, vector<1x1x400xf32>
    %7 = vector.shape_cast %6 : vector<1x1x400xf32> to vector<1x400xf32>
    %c0_11 = arith.constant 0 : index
    %c0_12 = arith.constant 0 : index
    %c0_13 = arith.constant 0 : index
    %8 = vector.load %arg1[%c0_11, %c0_12, %c0_13] : memref<3x2x96xf32, #tpu.memory_space<vmem>>, vector<1x2x96xf32>
    %9 = vector.shape_cast %8 : vector<1x2x96xf32> to vector<2x96xf32>
    %cst = arith.constant dense<0.000000e+00> : vector<2x400xf32>
    %10 = tpu.matmul %9, %1, %cst {dimension_numbers = #tpu.dot_dimension_numbers<[1], [0], [0], [1], [0, 0, 1, 1], [], []>} : vector<2x96xf32>, vector<96x400xf32>, vector<2x400xf32> -> vector<2x400xf32>
    %c1 = arith.constant 1 : index
    %c0_14 = arith.constant 0 : index
    %c0_15 = arith.constant 0 : index
    %11 = vector.load %arg1[%c1, %c0_14, %c0_15] : memref<3x2x96xf32, #tpu.memory_space<vmem>>, vector<1x2x96xf32>
    %12 = vector.shape_cast %11 : vector<1x2x96xf32> to vector<2x96xf32>
    %cst_16 = arith.constant dense<0.000000e+00> : vector<2x400xf32>
    %13 = tpu.matmul %12, %3, %cst_16 {dimension_numbers = #tpu.dot_dimension_numbers<[1], [0], [0], [1], [0, 0, 1, 1], [], []>} : vector<2x96xf32>, vector<96x400xf32>, vector<2x400xf32> -> vector<2x400xf32>
    %14 = arith.addf %10, %13 : vector<2x400xf32>
    %c2 = arith.constant 2 : index
    %c0_17 = arith.constant 0 : index
    %c0_18 = arith.constant 0 : index
    %15 = vector.load %arg1[%c2, %c0_17, %c0_18] : memref<3x2x96xf32, #tpu.memory_space<vmem>>, vector<1x2x96xf32>
    %16 = vector.shape_cast %15 : vector<1x2x96xf32> to vector<2x96xf32>
    %cst_19 = arith.constant dense<0.000000e+00> : vector<2x400xf32>
    %17 = tpu.matmul %16, %5, %cst_19 {dimension_numbers = #tpu.dot_dimension_numbers<[1], [0], [0], [1], [0, 0, 1, 1], [], []>} : vector<2x96xf32>, vector<96x400xf32>, vector<2x400xf32> -> vector<2x400xf32>
    %18 = arith.addf %14, %17 : vector<2x400xf32>
    %cst_20 = arith.constant 1.000000e+00 : f32
    %19 = vector.broadcast %cst_20 : f32 to vector<1x400xf32>
    %20 = arith.subf %19, %7 : vector<1x400xf32>
    %21 = vector.broadcast %20 : vector<1x400xf32> to vector<2x400xf32>
    %22 = arith.mulf %18, %21 : vector<2x400xf32>
    %cst_21 = arith.constant -1.000000e+30 : f32
    %23 = vector.broadcast %cst_21 : f32 to vector<1x400xf32>
    %24 = arith.mulf %7, %23 : vector<1x400xf32>
    %25 = vector.broadcast %24 : vector<1x400xf32> to vector<2x400xf32>
    %26 = arith.addf %22, %25 : vector<2x400xf32>
    %cst_22 = arith.constant dense<0xFF800000> : vector<2xf32>
    %27 = vector.multi_reduction <maximumf>, %26, %cst_22 [1] : vector<2x400xf32> to vector<2xf32>
    %28 = vector.shape_cast %27 : vector<2xf32> to vector<2x1xf32>
    %29 = vector.broadcast %28 : vector<2x1xf32> to vector<2x400xf32>
    %30 = arith.subf %26, %29 : vector<2x400xf32>
    %31 = math.exp %30 : vector<2x400xf32>
    %cst_23 = arith.constant dense<0.000000e+00> : vector<2xf32>
    %32 = vector.multi_reduction <add>, %31, %cst_23 [1] : vector<2x400xf32> to vector<2xf32>
    %33 = vector.shape_cast %32 : vector<2xf32> to vector<2x1xf32>
    %34 = math.log %33 : vector<2x1xf32>
    %35 = vector.broadcast %34 : vector<2x1xf32> to vector<2x400xf32>
    %36 = arith.subf %30, %35 : vector<2x400xf32>
    %c0_24 = arith.constant 0 : index
    %c0_25 = arith.constant 0 : index
    %c0_26 = arith.constant 0 : index
    %37 = vector.load %arg6[%c0_24, %c0_25, %c0_26] : memref<1x2x400xf32, #tpu.memory_space<vmem>>, vector<1x2x400xf32>
    %38 = vector.shape_cast %37 : vector<1x2x400xf32> to vector<2x400xf32>
    %39 = vector.shape_cast %36 : vector<2x400xf32> to vector<1x2x400xf32>
    tpu.vector_store %arg6[%c0_24, %c0_25, %c0_26], %39 {strides = array<i32>} : memref<1x2x400xf32, #tpu.memory_space<vmem>>, vector<1x2x400xf32>,
    return
  }
  func.func @transform_0(%arg0: i32) -> (i32, i32, i32) {
    %c0_i32 = arith.constant 0 : i32
    %c0_i32_0 = arith.constant 0 : i32
    %c0_i32_1 = arith.constant 0 : i32
    %c0_i32_2 = arith.constant 0 : i32
    return %c0_i32, %c0_i32_0, %c0_i32_1 : i32, i32, i32
  }
  func.func @transform_1(%arg0: i32) -> (i32, i32, i32) {
    %c0_i32 = arith.constant 0 : i32
    %c0_i32_0 = arith.constant 0 : i32
    %c0_i32_1 = arith.constant 0 : i32
    return %arg0, %c0_i32, %c0_i32_0 : i32, i32, i32
  }
  func.func @transform_2(%arg0: i32) -> (i32, i32, i32) {
    %c0_i32 = arith.constant 0 : i32
    %c0_i32_0 = arith.constant 0 : i32
    %c0_i32_1 = arith.constant 0 : i32
    return %arg0, %c0_i32, %c0_i32_0 : i32, i32, i32
  }
  func.func @transform_3(%arg0: i32) -> (i32, i32, i32) {
    %c0_i32 = arith.constant 0 : i32
    %c0_i32_0 = arith.constant 0 : i32
    %c0_i32_1 = arith.constant 0 : i32
    return %arg0, %c0_i32, %c0_i32_0 : i32, i32, i32
  }
  func.func @transform_4(%arg0: i32) -> (i32, i32, i32) {
    %c0_i32 = arith.constant 0 : i32
    %c0_i32_0 = arith.constant 0 : i32
    %c0_i32_1 = arith.constant 0 : i32
    return %arg0, %c0_i32, %c0_i32_0 : i32, i32, i32
  }
  func.func @transform_5(%arg0: i32) -> (i32, i32, i32) {
    %c0_i32 = arith.constant 0 : i32
    %c0_i32_0 = arith.constant 0 : i32
    %c0_i32_1 = arith.constant 0 : i32
    return %arg0, %c0_i32, %c0_i32_0 : i32, i32, i32
  }
}

</mosaic_0001>

<bundles_post_ra>
// kernel: pointer_forward.1
= control target key start
LH: loop header
LB: loop body
LE: loop exit
PB: predicated region body
PF: predicated region fallthrough
CT: control target
= control target key end

     0   :  { %10 = vsyncpa [#allocation3], 0  ;;  %s1816_s0 = inlined_call_operand.vmem [shape: f32[3,2,96], index: 0, kind: input, shape index: {}]   ;;  %s1817_s1 = inlined_call_operand.hbm [shape: f32[2,96,400], index: 1, kind: input, shape index: {}]   ;;  %s1818_s2 = inlined_call_operand.hbm [shape: f32[2,96,400], index: 2, kind: input, shape index: {}]   ;;  %s1819_s3 = inlined_call_operand.hbm [shape: f32[2,96,400], index: 3, kind: input, shape index: {}]   ;;  %s1820_s4 = inlined_call_operand.vmem [shape: f32[2,1,400], index: 4, kind: input, shape index: {}]   ;;  %s1821_s5 = inlined_call_operand.vmem [shape: f32[2,2,400], index: 5, kind: output, shape index: {}]  }
   0x1   :  { %12 = vsyncpa [#allocation3 + $0x1], 0 }
   0x2   :  { %13 = vsyncpa [#allocation5], 0 }
   0x3   :  { %15 = vsyncpa [#allocation5 + $0x1], 0  ;;  %s1422_s18 = smov 0   ;;  %s1424_s19 = smov 0  }
   0x4   :  { %s1426_s20 = smov 0   ;;  %s1428_s21 = smov 0  }
   0x5 LB: > { %s1441_s22 = sadd.s32 4294967295, %s1383_s21   ;;  %s1444_s23 = sadd.s32 1, %s1383_s21   ;;  %s1383_s21 = sphi %s1428_s21, %s1840_s21   ;;  %s1379_s20 = sphi %s1426_s20, %s1839_s20   ;;  %s1375_s19 = sphi %s1424_s19, %s1838_s19   ;;  %s1371_s18 = sphi %s1422_s18, %s1837_s18  }
   0x6   : > { %s46_s24 = ssub.s32 %s1383_s21, %s1444_s23  ;;  %s49_s25 = sadd.s32 1, %s1379_s20 }
   0x7   : > { %p47_p0 = scmp.eq.s32.totalorder %s46_s24, 0  ;;  %p56_p1 = scmp.ne.s32.totalorder %s1379_s20, %s1375_s19 }
   0x8   : > { %p57_p2 = scmp.eq.s32.totalorder %s1383_s21, 0  ;;  %p62_p3 = scmp.ne.s32.totalorder %s1375_s19, %s1371_s18 }
   0x9   : > { %s1454_s26 = scalar_select %p47_p0, %s1379_s20, %s49_s25  }
   0xa   : > { %p58_p4 = por %p57_p2, %p56_p1  ;;  %p63_p5 = scmp.eq.s32.totalorder %s1441_s22, 0 }
   0xb   : > { %p1214_p6 = scmp.lt.s32.totalorder %s1383_s21, 2  ;;  %s193_s28 = sand.u32 1, %s1379_s20  }
   0xc   : > { %p1458_p7 = por %p63_p5, %p62_p3  ;;  %s1465_s29 = smul.u32 384, %s193_s28 }
   0xd   : > { %p1467_p8 = pnand %p1214_p6, %p58_p4  ;;  %s1472_s6 = smul.u32 6144, %s1383_s21 }
   0xe   : > { %s1827_s27 = scalar_select %p1458_p7, 1, 0 }
   0xf   : > { %s214_s7 = sand.u32 1, %s1383_s21   ;;  %s1479_s10 = scalar_lea.hbm %s1818_s2, %s1472_s6 }
  0x10   : > { %s218_s11 = scalar_lea.vmem [#allocation4], %s1465_s29  ;;  %s1486_s13 = scalar_lea.sflag [#allocation5], %s214_s7 }
  0x11   : > { %s225_s12 = sshll.u32 %s218_s11, 4  ;;  %s1261_s14 = scalar_lea.hbm %s1479_s10, 6144  ;;  %s1483_s12 = int_to_ptr.vmem [resolvable:$true] %s225_s12 }
  0x12   : > { %p1262_p11 = scmp.ne.s32.totalorder %s1479_s10, %s1261_s14  ;;  %p1492_p12 = pneg %p1467_p8 }
  0x13   : > { %s1266_s18 = scalar_lea.hbm %s1818_s2, 12288  ;;  %p1267_p1 = scmp.lt.s32.totalorder %s1479_s10, %s1818_s2 }
  0x14   : > { %p1264_p13 = pnand %p1492_p12, %p1262_p11  ;;  %p1268_p2 = scmp.lt.s32.totalorder %s1266_s18, %s1261_s14 }
  0x16   : > { %p1265_p0 = pneg %p1264_p13  ;;  %p1269_p3 = por %p1268_p2, %p1267_p1 }
  0x18   : > { %p1270_p4 = pnand %p1269_p3, %p1265_p0 }
  0x1a   : > { %1273 = shalt.err (!%p1270_p4)
}
  0x1b   : > { %s1274_s7 = scalar_lea.vmem %s1483_s12, 6144  ;;  %s1385_s8 = smov [#allocation4]  }
  0x1c   : > { %p1275_p5 = scmp.ne.s32.totalorder %s1483_s12, %s1274_s7  ;;  %s1279_s9 = sshll.u32 %s1385_s8, 4  ;;  %s1280_s9 = int_to_ptr.vmem [resolvable:$false] %s1279_s9 }
  0x1d   : > { %s1281_s11 = scalar_lea.vmem %s1280_s9, 12288  ;;  %p1282_p13 = scmp.lt.s32.totalorder %s1483_s12, %s1280_s9 }
  0x1e   : > { %p1277_p6 = pnand %p1275_p5, %p1492_p12  ;;  %p1283_p9 = scmp.lt.s32.totalorder %s1281_s11, %s1274_s7 }
  0x20   : > { %p1278_p11 = pneg %p1277_p6  ;;  %p1284_p10 = por %p1283_p9, %p1282_p13 }
  0x22   : > { %p1285_p7 = pnand %p1284_p10, %p1278_p11 }
  0x24   : > { %1288 = shalt.err (!%p1285_p7)
}
  0x25   : > { %s1823_s14 = smov 512   ;;  %s1825_s16 = smov 32  }
  0x26   : > { %1210 = dma.hbm_to_vmem [thread:$0]  (!%p1467_p8), %s1479_s10, 6144, %s1483_s12, %s1486_s13, %s1823_s14, %s1823_s14, %s1825_s16  }
  0x27   : > { %p1830_p9 = scmp.lt.s32.totalorder %s1383_s21, 3  ;;  %p1831_p7 = scmp.ge.s32.totalorder %s1383_s21, 1 }
  0x28   : > { %s1530_s25 = scalar_lea.hbm %s1817_s1, %s1472_s6  ;;  %s197_s7 = scalar_lea.vmem [#allocation2], %s1465_s29 }
  0x29   : > { %p1522_p10 = pnand %p1831_p7, %p1830_p9  ;;  %s204_s8 = sshll.u32 %s197_s7, 4  ;;  %s1533_s8 = int_to_ptr.vmem [resolvable:$true] %s204_s8 }
  0x2a   : > { %s1539_s21 = scalar_lea.hbm %s1819_s3, %s1472_s6  ;;  %s194_s12 = scalar_lea.sflag [#allocation3], %s193_s28 }
  0x2b   : > { %s1832_s17 = scalar_select %p1522_p10, 1, 0 }
  0x2c   : > { %s1289_s11 = scalar_lea.hbm %s1530_s25, 6144  ;;  %s1294_s14 = scalar_lea.hbm %s1817_s1, 12288 }
  0x2d   : > { %p1290_p0 = scmp.ne.s32.totalorder %s1530_s25, %s1289_s11  ;;  %p1295_p3 = scmp.lt.s32.totalorder %s1530_s25, %s1817_s1 }
  0x2e   : > { %p1296_p4 = scmp.lt.s32.totalorder %s1294_s14, %s1289_s11 }
  0x2f   : > { %p1292_p1 = pnand %p1290_p0, %p1492_p12 }
  0x30   : > { %p1297_p5 = por %p1296_p4, %p1295_p3 }
  0x31   : > { %p1293_p2 = pneg %p1292_p1 }
  0x33   : > { %p1298_p6 = pnand %p1297_p5, %p1293_p2 }
  0x35   : > { %1301 = shalt.err (!%p1298_p6)
}
  0x36   : > { %s1302_s28 = scalar_lea.vmem %s1533_s8, 6144  ;;  %s1388_s6 = smov [#allocation2]  }
  0x37   : > { %p1303_p11 = scmp.ne.s32.totalorder %s1533_s8, %s1302_s28  ;;  %s1307_s9 = sshll.u32 %s1388_s6, 4  ;;  %s1308_s9 = int_to_ptr.vmem [resolvable:$false] %s1307_s9 }
  0x38   : > { %s1309_s10 = scalar_lea.vmem %s1308_s9, 12288  ;;  %p1310_p7 = scmp.lt.s32.totalorder %s1533_s8, %s1308_s9 }
  0x39   : > { %p1305_p13 = pnand %p1303_p11, %p1492_p12  ;;  %p1311_p0 = scmp.lt.s32.totalorder %s1309_s10, %s1302_s28 }
  0x3b   : > { %p1306_p9 = pneg %p1305_p13  ;;  %p1312_p1 = por %p1311_p0, %p1310_p7 }
  0x3d   : > { %p1313_p10 = pnand %p1312_p1, %p1306_p9 }
  0x3f   : > { %1316 = shalt.err (!%p1313_p10)
}
  0x40   : > { %s1833_s14 = smov 32   ;;  %s1834_s16 = smov 512  }
  0x41   : > { %1207 = dma.hbm_to_vmem [thread:$0]  (!%p1467_p8), %s1530_s25, 6144, %s1533_s8, %s194_s12, %s1834_s16, %s1834_s16, %s1833_s14  }
  0x42   : > { %s239_s11 = scalar_lea.vmem [#allocation6], %s1465_s29  ;;  %s1317_s24 = scalar_lea.hbm %s1539_s21, 6144 }
  0x43   : > { %s246_s18 = sshll.u32 %s239_s11, 4  ;;  %p1318_p2 = scmp.ne.s32.totalorder %s1539_s21, %s1317_s24  ;;  %s247_s18 = int_to_ptr.vmem [resolvable:$true] %s246_s18 }
  0x44   : > { %s1322_s6 = scalar_lea.hbm %s1819_s3, 12288  ;;  %p1323_p4 = scmp.lt.s32.totalorder %s1539_s21, %s1819_s3 }
  0x45   : > { %p1320_p10 = pnand %p1318_p2, %p1492_p12  ;;  %p1324_p5 = scmp.lt.s32.totalorder %s1322_s6, %s1317_s24 }
  0x47   : > { %p1321_p3 = pneg %p1320_p10  ;;  %p1325_p6 = por %p1324_p5, %p1323_p4 }
  0x49   : > { %p1326_p11 = pnand %p1325_p6, %p1321_p3 }
  0x4b   : > { %1329 = shalt.err (!%p1326_p11)
}
  0x4c   : > { %s1330_s29 = scalar_lea.vmem %s247_s18, 6144  ;;  %s1389_s25 = smov [#allocation6]  }
  0x4d   : > { %p1331_p13 = scmp.ne.s32.totalorder %s247_s18, %s1330_s29  ;;  %s1335_s8 = sshll.u32 %s1389_s25, 4  ;;  %s1336_s8 = int_to_ptr.vmem [resolvable:$false] %s1335_s8 }
  0x4e   : > { %s1337_s12 = scalar_lea.vmem %s1336_s8, 12288  ;;  %p1338_p0 = scmp.lt.s32.totalorder %s247_s18, %s1336_s8 }
  0x4f   : > { %p1333_p9 = pnand %p1331_p13, %p1492_p12  ;;  %p1339_p1 = scmp.lt.s32.totalorder %s1337_s12, %s1330_s29 }
  0x51   : > { %p1334_p7 = pneg %p1333_p9  ;;  %p1340_p2 = por %p1339_p1, %p1338_p0 }
  0x53   : > { %p1341_p10 = pnand %p1340_p2, %p1334_p7 }
  0x55   : > { %1344 = shalt.err (!%p1341_p10)
}
  0x56   : > { %1213 = dma.hbm_to_vmem [thread:$0]  (!%p1467_p8), %s1539_s21, 6144, %s247_s18, %s1486_s13, %s1834_s16, %s1834_s16, %s1833_s14  }
  0x57   : > { %p1835_p12 = scmp.ne.s32.totalorder %s1832_s17, 0 }
  0x58   : > { %s267_s15 = sand.u32 (!%p1835_p12), 1, %s1375_s19   ;;  %p1836_p3 = scmp.ne.s32.totalorder (!%p1835_p12), %s1827_s27, 0 }
  0x59   : > { %265 = sbr.rel (%p1835_p12) target bundleno = 709 (0x2c5), region = 40  ;;  %s268_s24 = scalar_lea.sflag (!%p1835_p12), [#allocation3], %s267_s15 }
  0x5a   : > { %s1590_s11 = smul.u32 (!%p1835_p12), 384, %s267_s15 }
  0x5c   : > { %s1593_s7 = scalar_lea.vmem (!%p1835_p12), [#allocation2], %s1590_s11 }
  0x5e   : > { %1362 = dma.done.wait (%p1836_p3), %s268_s24, 6144  }
  0x5f   : > { %1364 = vsyncadd (%p1836_p3), %s268_s24, 4294961152  ;;  %s276_s30 = sand.u32 1, %s1441_s22   ;;  %s1601_s17 = scalar_lea.vmem [#allocation4], %s1590_s11 }
  0x60   : > { %s277_s13 = scalar_lea.sflag [#allocation5], %s276_s30 }
  0x61   : > { %1366 = dma.done.wait (%p1836_p3), %s277_s13, 12288  }
  0x62   : > { %1368 = vsyncadd (%p1836_p3), %s277_s13, 4294955008  ;;  %v1390_v0 = vmov 0.0   ;;  %v432_v1 = vld [vmem:[%s1601_s17 + $0x168] sm:$0xff]  ;;  %v434_v2 = vld [vmem:[%s1601_s17 + $0x178] sm:$0xff]  ;;  %vm487_vm0 = vcmask 785408   ;;  %s1715_s18 = scalar_lea.vmem [#allocation6], %s1590_s11 }
  0x63   : > { %555 = vmatprep.mubr.f32.mxu0 %v1390_v0  ;;  %626 = vmatprep.mubr.f32.mxu1 %v1390_v0  ;;  %v431_v3 = vld [vmem:[%s1601_s17 + $0x160] sm:$0xff]  ;;  %v433_v4 = vld [vmem:[%s1601_s17 + $0x170] sm:$0xff]  ;;  %v428_v5 = vld [vmem:[%s1601_s17 + $0x148] sm:$0xff]  ;;  %p330_p8 = scmp.lt.s32.totalorder %s1441_s22, 1  ;;  %vm981_vm1 = vcmask 1041408   ;;  %vm985_vm2 = vcmask 123904  }
  0x64   : > { %499 = vmatprep.subr.mxu0 %v432_v1  ;;  %570 = vmatprep.subr.mxu1 %v434_v2  ;;  %v430_v6 = vld [vmem:[%s1601_s17 + $0x158] sm:$0xff]  ;;  %v427_v7 = vld [vmem:[%s1601_s17 + $0x140] sm:$0xff]  ;;  %v429_v8 = vld [vmem:[%s1601_s17 + $0x150] sm:$0xff]  ;;  %vm1041_vm3 = vcmask 1043458   ;;  %vm1043_vm5 = vcmask 1045508   ;;  %vm1045_vm7 = vcmask 130054  }
  0x65   : > { %500 = vmatpush1.msra.mxu0 %v431_v3  ;;  %571 = vmatpush1.msra.mxu1 %v433_v4  ;;  %v424_v9 = vld [vmem:[%s1601_s17 + $0x128] sm:$0xff]  ;;  %v426_v10 = vld [vmem:[%s1601_s17 + $0x138] sm:$0xff]  ;;  %v423_v11 = vld [vmem:[%s1601_s17 + $0x120] sm:$0xff]  ;;  %s1842_s22 = smov (!%p330_p8, %s1441_s22), 1 }
  0x66   : > { %501 = vmatprep.subr.mxu0 %v428_v5  ;;  %572 = vmatprep.subr.mxu1 %v430_v6  ;;  %v425_v12 = vld [vmem:[%s1601_s17 + $0x130] sm:$0xff]  ;;  %v420_v13 = vld [vmem:[%s1601_s17 + $0x108] sm:$0xff]  ;;  %v422_v14 = vld [vmem:[%s1601_s17 + $0x118] sm:$0xff]  ;;  %s1177_s9 = sshll.u32 %s1842_s22, 2  ;;  %s1190_s8 = sshll.u32 %s1842_s22, 3 }
  0x67   : > { %502 = vmatpush1.msra.mxu0 %v427_v7  ;;  %573 = vmatpush1.msra.mxu1 %v429_v8  ;;  %v419_v15 = vld [vmem:[%s1601_s17 + $0x100] sm:$0xff]  ;;  %v421_v16 = vld [vmem:[%s1601_s17 + $0x110] sm:$0xff]  ;;  %v416_v17 = vld [vmem:[%s1601_s17 + $0xe8] sm:$0xff]  ;;  %s333_s25 = scalar_lea.vmem %s1820_s4, %s1177_s9  ;;  %s338_s11 = scalar_lea.vmem %s1821_s5, %s1190_s8 }
  0x68   : > { %503 = vmatprep.subr.mxu0 %v424_v9  ;;  %574 = vmatprep.subr.mxu1 %v426_v10  ;;  %v418_v18 = vld [vmem:[%s1601_s17 + $0xf8] sm:$0xff]  ;;  %v415_v19 = vld [vmem:[%s1601_s17 + $0xe0] sm:$0xff]  ;;  %v417_v20 = vld [vmem:[%s1601_s17 + $0xf0] sm:$0xff] }
  0x69   : > { %504 = vmatpush1.msra.mxu0 %v423_v11  ;;  %575 = vmatpush1.msra.mxu1 %v425_v12  ;;  %v412_v21 = vld [vmem:[%s1601_s17 + $0xc8] sm:$0xff]  ;;  %v414_v22 = vld [vmem:[%s1601_s17 + $0xd8] sm:$0xff]  ;;  %v411_v23 = vld [vmem:[%s1601_s17 + $0xc0] sm:$0xff] }
  0x6a   : > { %505 = vmatprep.subr.mxu0 %v420_v13  ;;  %576 = vmatprep.subr.mxu1 %v422_v14  ;;  %v413_v24 = vld [vmem:[%s1601_s17 + $0xd0] sm:$0xff]  ;;  %v408_v25 = vld [vmem:[%s1601_s17 + $0xa8] sm:$0xff]  ;;  %v410_v26 = vld [vmem:[%s1601_s17 + $0xb8] sm:$0xff] }
  0x6b   : > { %506 = vmatpush1.msra.mxu0 %v419_v15  ;;  %577 = vmatpush1.msra.mxu1 %v421_v16  ;;  %v407_v27 = vld [vmem:[%s1601_s17 + $0xa0] sm:$0xff]  ;;  %v409_v28 = vld [vmem:[%s1601_s17 + $0xb0] sm:$0xff]  ;;  %v404_v29 = vld [vmem:[%s1601_s17 + $0x88] sm:$0xff] }
  0x6c   : > { %507 = vmatprep.subr.mxu0 %v416_v17  ;;  %578 = vmatprep.subr.mxu1 %v418_v18  ;;  %v406_v30 = vld [vmem:[%s1601_s17 + $0x98] sm:$0xff]  ;;  %v403_v31 = vld [vmem:[%s1601_s17 + $0x80] sm:$0xff]  ;;  %v405_v32 = vld [vmem:[%s1601_s17 + $0x90] sm:$0xff] }
  0x6d   : > { %508 = vmatpush1.msra.mxu0 %v415_v19  ;;  %579 = vmatpush1.msra.mxu1 %v417_v20  ;;  %v400_v33 = vld [vmem:[%s1601_s17 + $0x68] sm:$0xff]  ;;  %v402_v34 = vld [vmem:[%s1601_s17 + $0x78] sm:$0xff]  ;;  %v399_v35 = vld [vmem:[%s1601_s17 + $0x60] sm:$0xff] }
  0x6e   : > { %509 = vmatprep.subr.mxu0 %v412_v21  ;;  %580 = vmatprep.subr.mxu1 %v414_v22  ;;  %v401_v36 = vld [vmem:[%s1601_s17 + $0x70] sm:$0xff]  ;;  %v396_v37 = vld [vmem:[%s1601_s17 + $0x48] sm:$0xff]  ;;  %v398_v38 = vld [vmem:[%s1601_s17 + $0x58] sm:$0xff] }
  0x6f   : > { %510 = vmatpush1.msra.mxu0 %v411_v23  ;;  %581 = vmatpush1.msra.mxu1 %v413_v24  ;;  %v395_v39 = vld [vmem:[%s1601_s17 + $0x40] sm:$0xff]  ;;  %v397_v40 = vld [vmem:[%s1601_s17 + $0x50] sm:$0xff]  ;;  %v392_v41 = vld [vmem:[%s1601_s17 + $0x28] sm:$0xff] }
  0x70   : > { %511 = vmatprep.subr.mxu0 %v408_v25  ;;  %582 = vmatprep.subr.mxu1 %v410_v26  ;;  %v394_v42 = vld [vmem:[%s1601_s17 + $0x38] sm:$0xff]  ;;  %v391_v43 = vld [vmem:[%s1601_s17 + $0x20] sm:$0xff]  ;;  %v393_v44 = vld [vmem:[%s1601_s17 + $0x30] sm:$0xff] }
  0x71   : > { %512 = vmatpush1.msra.mxu0 %v407_v27  ;;  %583 = vmatpush1.msra.mxu1 %v409_v28  ;;  %v388_v45 = vld [vmem:[%s1601_s17 + $0x8] sm:$0xff]  ;;  %v390_v46 = vld [vmem:[%s1601_s17 + $0x18] sm:$0xff]  ;;  %v387_v47 = vld [vmem:[%s1601_s17] sm:$0xff] }
  0x72   : > { %513 = vmatprep.subr.mxu0 %v404_v29  ;;  %584 = vmatprep.subr.mxu1 %v406_v30  ;;  %v389_v48 = vld [vmem:[%s1601_s17 + $0x10] sm:$0xff]  ;;  %v1180_v49 = vld [vmem:[%s1816_s0 + $0x2] sm:$0x3]  ;;  %v384_v50 = vld [vmem:[%s1593_s7 + $0x168] sm:$0xff] }
  0x73   : > { %514 = vmatpush1.msra.mxu0 %v403_v31  ;;  %585 = vmatpush1.msra.mxu1 %v405_v32  ;;  %v386_v51 = vld [vmem:[%s1593_s7 + $0x178] sm:$0xff]  ;;  %v383_v52 = vld [vmem:[%s1593_s7 + $0x160] sm:$0xff]  ;;  %v385_v53 = vld [vmem:[%s1593_s7 + $0x170] sm:$0xff] }
  0x74   : > { %515 = vmatprep.subr.mxu0 %v400_v33  ;;  %586 = vmatprep.subr.mxu1 %v402_v34  ;;  %v380_v54 = vld [vmem:[%s1593_s7 + $0x148] sm:$0xff]  ;;  %v382_v55 = vld [vmem:[%s1593_s7 + $0x158] sm:$0xff]  ;;  %v379_v56 = vld [vmem:[%s1593_s7 + $0x140] sm:$0xff] }
  0x75   : > { %516 = vmatpush1.msra.mxu0 %v399_v35  ;;  %587 = vmatpush1.msra.mxu1 %v401_v36  ;;  %v381_v57 = vld [vmem:[%s1593_s7 + $0x150] sm:$0xff]  ;;  %v376_v58 = vld [vmem:[%s1593_s7 + $0x128] sm:$0xff]  ;;  %v378_v59 = vld [vmem:[%s1593_s7 + $0x138] sm:$0xff] }
  0x76   : > { %517 = vmatprep.subr.mxu0 %v396_v37  ;;  %588 = vmatprep.subr.mxu1 %v398_v38  ;;  %v375_v60 = vld [vmem:[%s1593_s7 + $0x120] sm:$0xff]  ;;  %v377_v61 = vld [vmem:[%s1593_s7 + $0x130] sm:$0xff]  ;;  %v372_v62 = vld [vmem:[%s1593_s7 + $0x108] sm:$0xff] }
  0x77   : > { %518 = vmatpush1.msra.mxu0 %v395_v39  ;;  %589 = vmatpush1.msra.mxu1 %v397_v40  ;;  %v374_v63 = vld [vmem:[%s1593_s7 + $0x118] sm:$0xff]  ;;  %v371_v1 = vld [vmem:[%s1593_s7 + $0x100] sm:$0xff]  ;;  %v373_v2 = vld [vmem:[%s1593_s7 + $0x110] sm:$0xff] }
  0x78   : > { %519 = vmatprep.subr.mxu0 %v392_v41  ;;  %590 = vmatprep.subr.mxu1 %v394_v42  ;;  %v368_v3 = vld [vmem:[%s1593_s7 + $0xe8] sm:$0xff]  ;;  %v370_v4 = vld [vmem:[%s1593_s7 + $0xf8] sm:$0xff]  ;;  %v367_v5 = vld [vmem:[%s1593_s7 + $0xe0] sm:$0xff] }
  0x79   : > { %520 = vmatpush1.msra.mxu0 %v391_v43  ;;  %591 = vmatpush1.msra.mxu1 %v393_v44  ;;  %v369_v6 = vld [vmem:[%s1593_s7 + $0xf0] sm:$0xff]  ;;  %v364_v7 = vld [vmem:[%s1593_s7 + $0xc8] sm:$0xff]  ;;  %v366_v8 = vld [vmem:[%s1593_s7 + $0xd8] sm:$0xff] }
  0x7a   : > { %521 = vmatprep.subr.mxu0 %v388_v45  ;;  %592 = vmatprep.subr.mxu1 %v390_v46  ;;  %v363_v9 = vld [vmem:[%s1593_s7 + $0xc0] sm:$0xff]  ;;  %v365_v10 = vld [vmem:[%s1593_s7 + $0xd0] sm:$0xff]  ;;  %v360_v11 = vld [vmem:[%s1593_s7 + $0xa8] sm:$0xff] }
  0x7b   : > { %522 = vmatpush1.msra.mxu0 %v387_v47  ;;  %593 = vmatpush1.msra.mxu1 %v389_v48  ;;  %v362_v12 = vld [vmem:[%s1593_s7 + $0xb8] sm:$0xff]  ;;  %v359_v13 = vld [vmem:[%s1593_s7 + $0xa0] sm:$0xff]  ;;  %v361_v14 = vld [vmem:[%s1593_s7 + $0xb0] sm:$0xff] }
  0x7c   : > { %1181 = vmatmul.mubr.msk.f32.vlgmr.msra.gmra.mxu0 %vm487_vm0, %v1180_v49  ;;  %1182 = vmatmul.mubr.msk.f32.vlgmr.msra.gmra.mxu1 %vm487_vm0, %v1180_v49  ;;  %v356_v15 = vld [vmem:[%s1593_s7 + $0x88] sm:$0xff]  ;;  %v358_v16 = vld [vmem:[%s1593_s7 + $0x98] sm:$0xff]  ;;  %v355_v17 = vld [vmem:[%s1593_s7 + $0x80] sm:$0xff] }
  0x7d   : > { %644 = vmatprep.subr.mxu0 %v384_v50  ;;  %715 = vmatprep.subr.mxu1 %v386_v51  ;;  %v357_v18 = vld [vmem:[%s1593_s7 + $0x90] sm:$0xff]  ;;  %v352_v19 = vld [vmem:[%s1593_s7 + $0x68] sm:$0xff]  ;;  %v354_v20 = vld [vmem:[%s1593_s7 + $0x78] sm:$0xff] }
  0x7e   : > { %645 = vmatpush1.msra.mxu0 %v383_v52  ;;  %716 = vmatpush1.msra.mxu1 %v385_v53  ;;  %v351_v21 = vld [vmem:[%s1593_s7 + $0x60] sm:$0xff]  ;;  %v353_v22 = vld [vmem:[%s1593_s7 + $0x70] sm:$0xff]  ;;  %v348_v23 = vld [vmem:[%s1593_s7 + $0x48] sm:$0xff] }
  0x7f   : > { %646 = vmatprep.subr.mxu0 %v380_v54  ;;  %717 = vmatprep.subr.mxu1 %v382_v55  ;;  %v350_v24 = vld [vmem:[%s1593_s7 + $0x58] sm:$0xff]  ;;  %v347_v25 = vld [vmem:[%s1593_s7 + $0x40] sm:$0xff]  ;;  %v349_v26 = vld [vmem:[%s1593_s7 + $0x50] sm:$0xff] }
  0x80   : > { %647 = vmatpush1.msra.mxu0 %v379_v56  ;;  %718 = vmatpush1.msra.mxu1 %v381_v57  ;;  %v344_v27 = vld [vmem:[%s1593_s7 + $0x28] sm:$0xff]  ;;  %v346_v28 = vld [vmem:[%s1593_s7 + $0x38] sm:$0xff]  ;;  %v343_v29 = vld [vmem:[%s1593_s7 + $0x20] sm:$0xff] }
  0x81   : > { %648 = vmatprep.subr.mxu0 %v376_v58  ;;  %719 = vmatprep.subr.mxu1 %v378_v59  ;;  %v345_v30 = vld [vmem:[%s1593_s7 + $0x30] sm:$0xff]  ;;  %v340_v31 = vld [vmem:[%s1593_s7 + $0x8] sm:$0xff]  ;;  %v342_v32 = vld [vmem:[%s1593_s7 + $0x18] sm:$0xff] }
  0x82   : > { %649 = vmatpush1.msra.mxu0 %v375_v60  ;;  %720 = vmatpush1.msra.mxu1 %v377_v61  ;;  %v339_v33 = vld [vmem:[%s1593_s7] sm:$0xff]  ;;  %v341_v34 = vld [vmem:[%s1593_s7 + $0x10] sm:$0xff]  ;;  %v480_v36 = vld [vmem:[%s1715_s18 + $0x168] sm:$0xff] }
  0x83   : > { %650 = vmatprep.subr.mxu0 %v372_v62  ;;  %721 = vmatprep.subr.mxu1 %v374_v63  ;;  %v484_v35 = vld [vmem:[%s1816_s0] sm:$0x3]  ;;  %v482_v37 = vld [vmem:[%s1715_s18 + $0x178] sm:$0xff]  ;;  %v481_v39 = vld [vmem:[%s1715_s18 + $0x170] sm:$0xff] }
  0x84   : > { %651 = vmatpush1.msra.mxu0 %v371_v1  ;;  %722 = vmatpush1.msra.mxu1 %v373_v2  ;;  %v479_v38 = vld [vmem:[%s1715_s18 + $0x160] sm:$0xff]  ;;  %v476_v40 = vld [vmem:[%s1715_s18 + $0x148] sm:$0xff]  ;;  %v478_v41 = vld [vmem:[%s1715_s18 + $0x158] sm:$0xff] }
  0x85   : > { %652 = vmatprep.subr.mxu0 %v368_v3  ;;  %723 = vmatprep.subr.mxu1 %v370_v4  ;;  %v475_v42 = vld [vmem:[%s1715_s18 + $0x140] sm:$0xff]  ;;  %v477_v43 = vld [vmem:[%s1715_s18 + $0x150] sm:$0xff]  ;;  %v472_v44 = vld [vmem:[%s1715_s18 + $0x128] sm:$0xff] }
  0x86   : > { %653 = vmatpush1.msra.mxu0 %v367_v5  ;;  %724 = vmatpush1.msra.mxu1 %v369_v6  ;;  %v474_v45 = vld [vmem:[%s1715_s18 + $0x138] sm:$0xff]  ;;  %v471_v46 = vld [vmem:[%s1715_s18 + $0x120] sm:$0xff]  ;;  %v473_v47 = vld [vmem:[%s1715_s18 + $0x130] sm:$0xff] }
  0x87   : > { %654 = vmatprep.subr.mxu0 %v364_v7  ;;  %725 = vmatprep.subr.mxu1 %v366_v8  ;;  %v468_v48 = vld [vmem:[%s1715_s18 + $0x108] sm:$0xff]  ;;  %v470_v49 = vld [vmem:[%s1715_s18 + $0x118] sm:$0xff]  ;;  %v467_v50 = vld [vmem:[%s1715_s18 + $0x100] sm:$0xff] }
  0x88   : > { %655 = vmatpush1.msra.mxu0 %v363_v9  ;;  %726 = vmatpush1.msra.mxu1 %v365_v10  ;;  %v469_v51 = vld [vmem:[%s1715_s18 + $0x110] sm:$0xff]  ;;  %v464_v52 = vld [vmem:[%s1715_s18 + $0xe8] sm:$0xff]  ;;  %v466_v53 = vld [vmem:[%s1715_s18 + $0xf8] sm:$0xff] }
  0x89   : > { %656 = vmatprep.subr.mxu0 %v360_v11  ;;  %727 = vmatprep.subr.mxu1 %v362_v12  ;;  %v463_v54 = vld [vmem:[%s1715_s18 + $0xe0] sm:$0xff]  ;;  %v465_v55 = vld [vmem:[%s1715_s18 + $0xf0] sm:$0xff]  ;;  %v460_v56 = vld [vmem:[%s1715_s18 + $0xc8] sm:$0xff] }
  0x8a   : > { %657 = vmatpush1.msra.mxu0 %v359_v13  ;;  %728 = vmatpush1.msra.mxu1 %v361_v14  ;;  %v462_v57 = vld [vmem:[%s1715_s18 + $0xd8] sm:$0xff]  ;;  %v459_v58 = vld [vmem:[%s1715_s18 + $0xc0] sm:$0xff]  ;;  %v461_v59 = vld [vmem:[%s1715_s18 + $0xd0] sm:$0xff] }
  0x8b   : > { %658 = vmatprep.subr.mxu0 %v356_v15  ;;  %729 = vmatprep.subr.mxu1 %v358_v16  ;;  %v456_v60 = vld [vmem:[%s1715_s18 + $0xa8] sm:$0xff]  ;;  %v458_v61 = vld [vmem:[%s1715_s18 + $0xb8] sm:$0xff]  ;;  %v455_v62 = vld [vmem:[%s1715_s18 + $0xa0] sm:$0xff] }
  0x8c   : > { %659 = vmatpush1.msra.mxu0 %v355_v17  ;;  %730 = vmatpush1.msra.mxu1 %v357_v18  ;;  %v457_v63 = vld [vmem:[%s1715_s18 + $0xb0] sm:$0xff]  ;;  %v452_v1 = vld [vmem:[%s1715_s18 + $0x88] sm:$0xff]  ;;  %v454_v2 = vld [vmem:[%s1715_s18 + $0x98] sm:$0xff] }
  0x8d   : > { %660 = vmatprep.subr.mxu0 %v352_v19  ;;  %731 = vmatprep.subr.mxu1 %v354_v20  ;;  %v451_v3 = vld [vmem:[%s1715_s18 + $0x80] sm:$0xff]  ;;  %v453_v4 = vld [vmem:[%s1715_s18 + $0x90] sm:$0xff]  ;;  %v448_v5 = vld [vmem:[%s1715_s18 + $0x68] sm:$0xff] }
  0x8e   : > { %661 = vmatpush1.msra.mxu0 %v351_v21  ;;  %732 = vmatpush1.msra.mxu1 %v353_v22  ;;  %v450_v6 = vld [vmem:[%s1715_s18 + $0x78] sm:$0xff]  ;;  %v447_v7 = vld [vmem:[%s1715_s18 + $0x60] sm:$0xff]  ;;  %v449_v8 = vld [vmem:[%s1715_s18 + $0x70] sm:$0xff]  ;;  %v931_v22 = vlaneseq }
  0x8f   : > { %662 = vmatprep.subr.mxu0 %v348_v23  ;;  %733 = vmatprep.subr.mxu1 %v350_v24  ;;  %v444_v9 = vld [vmem:[%s1715_s18 + $0x48] sm:$0xff]  ;;  %v446_v10 = vld [vmem:[%s1715_s18 + $0x58] sm:$0xff]  ;;  %v443_v11 = vld [vmem:[%s1715_s18 + $0x40] sm:$0xff] }
  0x90   : > { %663 = vmatpush1.msra.mxu0 %v347_v25  ;;  %734 = vmatpush1.msra.mxu1 %v349_v26  ;;  %v445_v12 = vld [vmem:[%s1715_s18 + $0x50] sm:$0xff]  ;;  %v440_v13 = vld [vmem:[%s1715_s18 + $0x28] sm:$0xff]  ;;  %v442_v14 = vld [vmem:[%s1715_s18 + $0x38] sm:$0xff]  ;;  %v1783_v25 = vshrl.u32 %v931_v22, 7 }
  0x91   : > { %664 = vmatprep.subr.mxu0 %v344_v27  ;;  %735 = vmatprep.subr.mxu1 %v346_v28  ;;  %v439_v15 = vld [vmem:[%s1715_s18 + $0x20] sm:$0xff]  ;;  %v441_v16 = vld [vmem:[%s1715_s18 + $0x30] sm:$0xff]  ;;  %v436_v17 = vld [vmem:[%s1715_s18 + $0x8] sm:$0xff] }
  0x92   : > { %665 = vmatpush1.msra.mxu0 %v343_v29  ;;  %736 = vmatpush1.msra.mxu1 %v345_v30  ;;  %v438_v18 = vld [vmem:[%s1715_s18 + $0x18] sm:$0xff]  ;;  %v435_v19 = vld [vmem:[%s1715_s18] sm:$0xff]  ;;  %v437_v20 = vld [vmem:[%s1715_s18 + $0x10] sm:$0xff] }
  0x93   : > { %666 = vmatprep.subr.mxu0 %v340_v31  ;;  %737 = vmatprep.subr.mxu1 %v342_v32  ;;  %v1185_v21 = vld [vmem:[%s1816_s0 + $0x4] sm:$0x3]  ;;  %v483_v27 = vld [vmem:[%s333_s25] sm:$0xf]  ;;  %v933_v31 = vsub.s32 0, %v1783_v25  ;;  %v941_v32 = vsub.s32 2, %v1783_v25  ;;  %vm1042_vm4 = vmor %vm1041_vm3, %vm981_vm1 }
  0x94   : > { %667 = vmatpush1.msra.mxu0 %v339_v33  ;;  %700 = vmatprep.mubr.f32.mxu0 %v1390_v0  ;;  %v929_v30 = vsub.f32 1.0, %v483_v27  ;;  %v955_v33 = vmul.f32 -1e+30, %v483_v27  ;;  %vm1044_vm6 = vmor %vm1043_vm5, %vm1042_vm4 }
  0x95   : > { %738 = vmatpush1.msra.mxu1 %v341_v34  ;;  %771 = vmatprep.mubr.f32.mxu1 %v1390_v0  ;;  %v937_v34 = vsub.s32 1, %v1783_v25  ;;  %vm1046_vm8 = vmor %vm1045_vm7, %vm1044_vm6 }
  0x96   : > { %1183 = vmatmul.mubr.msk.f32.vlgmr.msra.gmra.mxu0 %vm487_vm0, %v484_v35  ;;  %1184 = vmatmul.mubr.msk.f32.vlgmr.msra.gmra.mxu1 %vm487_vm0, %v484_v35  ;;  %v945_v35 = vsub.s32 3, %v1783_v25 }
  0x97   : > { %791 = vmatprep.subr.mxu0 %v480_v36  ;;  %862 = vmatprep.subr.mxu1 %v482_v37 }
  0x98   : > { %792 = vmatpush1.msra.mxu0 %v479_v38  ;;  %863 = vmatpush1.msra.mxu1 %v481_v39 }
  0x99   : > { %793 = vmatprep.subr.mxu0 %v476_v40  ;;  %864 = vmatprep.subr.mxu1 %v478_v41  ;;  %v934_v40 = vrot.slane %v929_v30, %v933_v31  ;;  %v942_v41 = vrot.slane %v929_v30, %v941_v32 }
  0x9a   : > { %794 = vmatpush1.msra.mxu0 %v475_v42  ;;  %865 = vmatpush1.msra.mxu1 %v477_v43  ;;  %v960_v43 = vrot.slane %v955_v33, %v933_v31  ;;  %v1391_v31 = vmov 1983009808  }
  0x9b   : > { %795 = vmatprep.subr.mxu0 %v472_v44  ;;  %866 = vmatprep.subr.mxu1 %v474_v45  ;;  %v968_v45 = vrot.slane %v955_v33, %v941_v32  ;;  %v1026_v32 = vunpack.c.l.s4 %v1391_v31 }
  0x9c   : > { %796 = vmatpush1.msra.mxu0 %v471_v46  ;;  %867 = vmatpush1.msra.mxu1 %v473_v47  ;;  %v938_v46 = vrot.slane %v929_v30, %v937_v34  ;;  %v946_v47 = vrot.slane %v929_v30, %v945_v35 }
  0x9d   : > { %797 = vmatprep.subr.mxu0 %v468_v48  ;;  %868 = vmatprep.subr.mxu1 %v470_v49 }
  0x9e   : > { %798 = vmatpush1.msra.mxu0 %v467_v50  ;;  %869 = vmatpush1.msra.mxu1 %v469_v51 }
  0x9f   : > { %799 = vmatprep.subr.mxu0 %v464_v52  ;;  %870 = vmatprep.subr.mxu1 %v466_v53  ;;  %v964_v53 = vrot.slane %v955_v33, %v937_v34 }
  0xa0   : > { %800 = vmatpush1.msra.mxu0 %v463_v54  ;;  %871 = vmatpush1.msra.mxu1 %v465_v55  ;;  %v972_v55 = vrot.slane %v955_v33, %v945_v35  ;;  %v1027_v33 = vunpack.c.0.s8 %v1026_v32 }
  0xa1   : > { %801 = vmatprep.subr.mxu0 %v460_v56  ;;  %872 = vmatprep.subr.mxu1 %v462_v57 }
  0xa2   : > { %802 = vmatpush1.msra.mxu0 %v459_v58  ;;  %873 = vmatpush1.msra.mxu1 %v461_v59 }
  0xa3   : > { %803 = vmatprep.subr.mxu0 %v456_v60  ;;  %874 = vmatprep.subr.mxu1 %v458_v61 }
  0xa4   : > { %804 = vmatpush1.msra.mxu0 %v455_v62  ;;  %875 = vmatpush1.msra.mxu1 %v457_v63 }
  0xa5   : > { %805 = vmatprep.subr.mxu0 %v452_v1  ;;  %876 = vmatprep.subr.mxu1 %v454_v2 }
  0xa6   : > { %806 = vmatpush1.msra.mxu0 %v451_v3  ;;  %877 = vmatpush1.msra.mxu1 %v453_v4 }
  0xa7   : > { %807 = vmatprep.subr.mxu0 %v448_v5  ;;  %878 = vmatprep.subr.mxu1 %v450_v6 }
  0xa8   : > { %808 = vmatpush1.msra.mxu0 %v447_v7  ;;  %879 = vmatpush1.msra.mxu1 %v449_v8 }
  0xa9   : > { %809 = vmatprep.subr.mxu0 %v444_v9  ;;  %880 = vmatprep.subr.mxu1 %v446_v10 }
  0xaa   : > { %810 = vmatpush1.msra.mxu0 %v443_v11  ;;  %881 = vmatpush1.msra.mxu1 %v445_v12 }
  0xab   : > { %811 = vmatprep.subr.mxu0 %v440_v13  ;;  %882 = vmatprep.subr.mxu1 %v442_v14 }
  0xac   : > { %812 = vmatpush1.msra.mxu0 %v439_v15  ;;  %883 = vmatpush1.msra.mxu1 %v441_v16 }
  0xad   : > { %813 = vmatprep.subr.mxu0 %v436_v17  ;;  %884 = vmatprep.subr.mxu1 %v438_v18 }
  0xae   : > { %814 = vmatpush1.msra.mxu0 %v435_v19  ;;  %847 = vmatprep.mubr.f32.mxu0 %v1390_v0 }
  0xaf   : > { %885 = vmatpush1.msra.mxu1 %v437_v20  ;;  %918 = vmatprep.mubr.f32.mxu1 %v1390_v0 }
  0xb0   : > { %1186 = vmatmul.mubr.msk.f32.vlgmr.msra.gmra.mxu0 %vm487_vm0, %v1185_v21  ;;  %1187 = vmatmul.mubr.msk.f32.vlgmr.msra.gmra.mxu1 %vm487_vm0, %v1185_v21 }
 0x13c   : > { %v557_v23 = vpop.f32.mrf.mxu0  ;;  %v628_v24 = vpop.f32.mrf.mxu1 }
 0x13e   : > { %v559_v26 = vpop.f32.mrf.mxu0  ;;  %v630_v0 = vpop.f32.mrf.mxu1 }
 0x156   : > { %v702_v28 = vpop.f32.mrf.mxu0  ;;  %v773_v29 = vpop.f32.mrf.mxu1 }
 0x157   : > { %v703_v38 = vadd.f32 %v702_v28, %v557_v23  ;;  %v774_v39 = vadd.f32 %v773_v29, %v628_v24 }
 0x158   : > { %v704_v36 = vpop.f32.mrf.mxu0  ;;  %v775_v37 = vpop.f32.mrf.mxu1 }
 0x159   : > { %v705_v48 = vadd.f32 %v704_v36, %v559_v26  ;;  %v776_v49 = vadd.f32 %v775_v37, %v630_v0  ;;  %v1030_v36 = vsub.s32 %v1027_v33, %v1783_v25 }
 0x170   : > { %v849_v42 = vpop.f32.mrf.mxu0  ;;  %v920_v44 = vpop.f32.mrf.mxu1 }
 0x171   : > { %v925_v50 = vadd.f32 %v849_v42, %v703_v38  ;;  %v927_v51 = vadd.f32 %v920_v44, %v774_v39 }
 0x172   : > { %v851_v52 = vpop.f32.mrf.mxu0  ;;  %v922_v54 = vpop.f32.mrf.mxu1 }
 0x173   : > { %v951_v56 = vmul.f32 %v934_v40, %v925_v50  ;;  %v953_v57 = vmul.f32 %v942_v41, %v927_v51  ;;  %v926_v58 = vadd.f32 %v851_v52, %v705_v48  ;;  %v928_v59 = vadd.f32 %v922_v54, %v776_v49 }
 0x175   : > { %v977_v60 = vadd.f32 %v960_v43, %v951_v56  ;;  %v979_v61 = vadd.f32 %v968_v45, %v953_v57  ;;  %v952_v62 = vmul.f32 %v938_v46, %v926_v58  ;;  %v954_v63 = vmul.f32 %v946_v47, %v928_v59 }
 0x177   : > { %v978_v1 = vadd.f32 %v964_v53, %v952_v62  ;;  %v980_v2 = vadd.f32 %v972_v55, %v954_v63  ;;  %v982_v3 = vsel %vm981_vm1, %v977_v60, -inf  ;;  %v984_v5 = vsel %vm981_vm1, %v979_v61, -inf }
 0x179   : > { %v983_v4 = vsel %vm981_vm1, %v978_v1, -inf  ;;  %v986_v6 = vsel %vm985_vm2, %v980_v2, -inf }
 0x17a   : > { %v987_v7 = vmax.f32 %v982_v3, %v983_v4  ;;  %v988_v8 = vmax.f32 %v984_v5, %v986_v6 }
 0x17c   : > { %v989_v9 = vmax.f32 %v987_v7, %v988_v8 }
 0x17e   : > { %990 = vmax.xlane.f32.xlu0 %v989_v9 }
 0x207   : > { %v991_v10 = vpop.xlane.xlu0 %990 }
 0x208   : > { %v992_v11 = vsub.f32 %v977_v60, %v991_v10  ;;  %v993_v12 = vsub.f32 %v978_v1, %v991_v10  ;;  %v994_v13 = vsub.f32 %v979_v61, %v991_v10  ;;  %v995_v14 = vsub.f32 %v980_v2, %v991_v10 }
 0x20a   : > { %v996_v15 = vmul.f32 1.442695, %v992_v11  ;;  %v998_v16 = vmul.f32 1.442695, %v993_v12  ;;  %v1000_v17 = vmul.f32 1.442695, %v994_v13 }
 0x20b   : > { %v1002_v18 = vmul.f32 1.442695, %v995_v14 }
 0x20c   : > { %1251 = vpow2.f32 %v996_v15 }
 0x20d   : > { %1253 = vpow2.f32 %v998_v16 }
 0x20e   : > { %1255 = vpow2.f32 %v1000_v17 }
 0x20f   : > { %1257 = vpow2.f32 %v1002_v18 }
 0x219   : > { %v1252_v19 = vpop.eup %1251 }
 0x21a   : > { %v1254_v20 = vpop.eup %1253  ;;  %v1004_v21 = vsel %vm981_vm1, %v1252_v19, 0.0 }
 0x21b   : > { %v1256_v22 = vpop.eup %1255  ;;  %v1005_v23 = vsel %vm981_vm1, %v1254_v20, 0.0 }
 0x21c   : > { %v1258_v24 = vpop.eup %1257  ;;  %v1006_v26 = vadd.f32 %v1005_v23, %v1004_v21  ;;  %v1007_v0 = vsel %vm981_vm1, %v1256_v22, 0.0 }
 0x21d   : > { %v1009_v28 = vsel %vm985_vm2, %v1258_v24, 0.0 }
 0x21e   : > { %v1008_v27 = vadd.f32 %v1007_v0, %v1006_v26 }
 0x220   : > { %v1010_v29 = vadd.f32 %v1009_v28, %v1008_v27 }
 0x222   : > { %1011 = vadd.xlane.f32.xlu0 %v1010_v29 }
 0x2ab   : > { %v1012_v30 = vpop.xlane.xlu0 %1011 }
 0x2ac   : > { %1259 = vlog2.f32 %v1012_v30 }
 0x2b9   : > { %v1260_v34 = vpop.eup %1259 }
 0x2ba   : > { %v1014_v35 = vmul.f32 0.6931472, %v1260_v34 }
 0x2bc   : > { %v1015_v37 = vsub.f32 %v992_v11, %v1014_v35  ;;  %v1016_v38 = vsub.f32 %v993_v12, %v1014_v35  ;;  %v1017_v39 = vsub.f32 %v994_v13, %v1014_v35  ;;  %v1018_v40 = vsub.f32 %v995_v14, %v1014_v35 }
 0x2be   : > { %v1023_v41 = vcombine.low %v1015_v37, %v1016_v38  ;;  %v1024_v42 = vcombine.low %v1017_v39, %v1018_v40 }
 0x2c0   : > { %v1031_v43 = vrot.slane %v1023_v41, %v1030_v36  ;;  %v1038_v44 = vrot.slane %v1024_v42, %v1030_v36 }
 0x2c2   : > { %v1039_v45 = vcombine.low %v1031_v43, %v1038_v44 }
 0x2c4   : > { %1047 = vst.msk [vmem:[%s338_s11] sm:$0xff] %vm1046_vm8, %v1039_v45 }
 0x2c5 PF: > { %p18_p4 = scmp.ge.s32.totalorder %s1444_s23, 4   ;;  %s1837_s18 = smov %s1375_s19 }
 0x2c6   : > { %s1838_s19 = smov %s1379_s20  ;;  %s1839_s20 = smov %s1454_s26 }
 0x2c7   : > { %s1840_s21 = smov %s1444_s23  ;;  %20 = sbr.rel (!%p18_p4) target bundleno = 5 (0x5), region = 109 }
 0x2cc   :  { %1069 = vsyncpa [#allocation3], 1 }
 0x2cd   :  { %1071 = vsyncpa [#allocation3 + $0x1], 1 }
 0x2ce   :  { %1072 = vsyncpa [#allocation5], 1 }
 0x2cf   :  { %1074 = vsyncpa [#allocation5 + $0x1], 1 }

</bundles_post_ra>
